<compile_context>
chip_gen: v7x
topology: tpu7x:2x2x1
jax: 0.10.0
libtpu: 0.0.40
codegen_flags: <defaults>
</compile_context>

<pallas_src>
import jax
import jax.numpy as jnp
from jax.experimental import pallas as pl
from jax.experimental.pallas import tpu as pltpu

_LANES = 128
_MAX_BLOCK_ROWS = 4096      # 4096 * 128 * 4 B = 2 MiB per input block
_NCORES = 2                 # outer "parallel" grid axis (v7x megacore; harmless on 1-TC chips)


def _cmse_kernel(p_ref, t_ref, out_ref, acc_ref):
    """Accumulate sum((p - t)^2) of this tile into an (8, 128) accumulator."""
    i = pl.program_id(1)

    @pl.when(i == 0)
    def _():
        acc_ref[...] = jnp.zeros_like(acc_ref)

    d = p_ref[...] - t_ref[...]
    # Fold the (block_rows, 128) tile onto the (8, 128) accumulator.  The
    # reshape only regroups whole (8, 128) sub-tiles, so it is layout-free and
    # the axis-0 reduction is pure VPU adds hidden under the input DMA.
    acc_ref[...] += jnp.sum((d * d).reshape(-1, 8, _LANES), axis=0)

    @pl.when(i == pl.num_programs(1) - 1)
    def _():
        out_ref[...] = acc_ref[...]


def _round_up(x, m):
    return ((x + m - 1) // m) * m


def _as_f32_stream(x):
    """Flatten to a float32 1-D stream; complex becomes interleaved (re, im)."""
    if jnp.iscomplexobj(x):
        # TODO(synk): XLA has no zero-copy complex64->float32 bitcast; this
        # stack is one fused materialization pass (still avoids streaming
        # separate re/im planes plus zero planes through the kernel).
        return jnp.stack([jnp.real(x), jnp.imag(x)],
                         axis=-1).astype(jnp.float32).reshape(-1)
    # TODO(synk): for bf16 inputs, streaming the native dtype and casting
    # in-register would halve DMA traffic; f32/complex64 paths are unaffected.
    return x.astype(jnp.float32).reshape(-1)


def cmatrix_mse_loss(predicted_matrix, target_matrix):
    """Pallas equivalent of CMatrixMSELoss.forward. Returns scalar float32."""
    assert predicted_matrix.shape == target_matrix.shape
    numel = int(predicted_matrix.size)
    if numel == 0:
        return jnp.float32(jnp.nan)   # matches torch 0/0 behavior

    p = _as_f32_stream(predicted_matrix)
    t = _as_f32_stream(target_matrix)
    n_f = p.shape[0]                  # number of float32 elements per stream

    # Size the block from the data: up to 2 MiB per input block, always a
    # multiple of the (8, 128) tile, split evenly across the NCORES axis.
    block_rows = min(_MAX_BLOCK_ROWS,
                     _round_up(pl.cdiv(n_f, _LANES * _NCORES), 8))
    chunk = _NCORES * block_rows * _LANES
    padded = pl.cdiv(n_f, chunk) * chunk
    pad = padded - n_f
    if pad:
        p = jnp.pad(p, (0, pad))      # zero tail: contributes 0 to the sum
        t = jnp.pad(t, (0, pad))
    rows = padded // _LANES
    inner = rows // (_NCORES * block_rows)

    p = p.reshape(rows, _LANES)
    t = t.reshape(rows, _LANES)

    in_spec = pl.BlockSpec((block_rows, _LANES),
                           lambda c, i: (c * inner + i, 0))

    partials = pl.pallas_call(
        _cmse_kernel,
        out_shape=jax.ShapeDtypeStruct((_NCORES, 8, _LANES), jnp.float32),
        grid=(_NCORES, inner),
        in_specs=[in_spec, in_spec],
        out_specs=pl.BlockSpec((None, 8, _LANES), lambda c, i: (c, 0, 0)),
        scratch_shapes=[pltpu.VMEM((8, _LANES), jnp.float32)],
        compiler_params=pltpu.CompilerParams(
            dimension_semantics=("parallel", "arbitrary")),
    )(p, t)

    return jnp.sum(partials) * jnp.float32(1.0 / numel)


def _reference(pred, target):
    diff = pred - target
    return jnp.sum(jnp.abs(diff).astype(jnp.float32) ** 2) / pred.size


if __name__ == "__main__":
    key = jax.random.PRNGKey(0)
    k1, k2, k3, k4 = jax.random.split(key, 4)
    shape = (2, 4, 16, 16)  # small "channel matrix" batch

    # Complex-valued predicted / target matrices (C-matrix).
    pred = (jax.random.normal(k1, shape, jnp.float32)
            + 1j * jax.random.normal(k2, shape, jnp.float32)).astype(jnp.complex64)
    targ = (jax.random.normal(k3, shape, jnp.float32)
            + 1j * jax.random.normal(k4, shape, jnp.float32)).astype(jnp.complex64)

    loss = cmatrix_mse_loss(pred, targ)
    jax.block_until_ready(loss)
    ref = _reference(pred, targ)
    assert jnp.allclose(loss, ref, rtol=1e-5, atol=1e-5), (loss, ref)

    # Real-valued path (2-input stream, no zero imaginary planes).
    loss_r = cmatrix_mse_loss(jnp.real(pred), jnp.real(targ))
    jax.block_until_ready(loss_r)
    ref_r = _reference(jnp.real(pred), jnp.real(targ))
    assert jnp.allclose(loss_r, ref_r, rtol=1e-5, atol=1e-5), (loss_r, ref_r)

    # Ragged shape (exercises the zero-padded tail).
    k5, k6 = jax.random.split(k4)
    a = jax.random.normal(k5, (3, 5, 17, 13), jnp.float32)
    b = jax.random.normal(k6, (3, 5, 17, 13), jnp.float32)
    loss_g = cmatrix_mse_loss(a, b)
    jax.block_until_ready(loss_g)
    ref_g = _reference(a, b)
    assert jnp.allclose(loss_g, ref_g, rtol=1e-5, atol=1e-5), (loss_g, ref_g)

    print("KERNEL_OK")
</pallas_src>

<mosaic_0001>
module attributes {stable_mosaic.version = 11 : i64} {
  func.func @_cmse_kernel(%arg0: i32, %arg1: i32, %arg2: memref<16x128xf32, #tpu.memory_space<vmem>>, %arg3: memref<16x128xf32, #tpu.memory_space<vmem>>, %arg4: memref<1x8x128xf32, #tpu.memory_space<vmem>>, %arg5: memref<8x128xf32, #tpu.memory_space<vmem>>) attributes {dimension_semantics = [#tpu.dimension_semantics<parallel>, #tpu.dimension_semantics<arbitrary>], iteration_bounds = array<i64: 2, 1>, scalar_prefetch = 0 : i64, scratch_operands = 1 : i64, tpu.core_type = #tpu.core_type<tc>, window_params = [{transform_indices = @transform_0, window_bounds = array<i64: 16, 128>}, {transform_indices = @transform_1, window_bounds = array<i64: 16, 128>}, {transform_indices = @transform_2, window_bounds = array<i64: 1, 8, 128>}]} {
    %c0_i32 = arith.constant 0 : i32
    %0 = arith.cmpi eq, %arg1, %c0_i32 : i32
    %1 = arith.extui %0 : i1 to i32
    %c0_i32_0 = arith.constant 0 : i32
    %2 = arith.cmpi ne, %1, %c0_i32_0 : i32
    scf.if %2 {
      %cst_10 = arith.constant 0.000000e+00 : f32
      %15 = vector.broadcast %cst_10 : f32 to vector<8x128xf32>
      %c0_11 = arith.constant 0 : index
      %c0_12 = arith.constant 0 : index
      %16 = vector.load %arg5[%c0_11, %c0_12] : memref<8x128xf32, #tpu.memory_space<vmem>>, vector<8x128xf32>
      tpu.vector_store %arg5[%c0_11, %c0_12], %15 {strides = array<i32>} : memref<8x128xf32, #tpu.memory_space<vmem>>, vector<8x128xf32>,
    } else {
    }
    %c0 = arith.constant 0 : index
    %c0_1 = arith.constant 0 : index
    %3 = vector.load %arg2[%c0, %c0_1] : memref<16x128xf32, #tpu.memory_space<vmem>>, vector<16x128xf32>
    %c0_2 = arith.constant 0 : index
    %c0_3 = arith.constant 0 : index
    %4 = vector.load %arg3[%c0_2, %c0_3] : memref<16x128xf32, #tpu.memory_space<vmem>>, vector<16x128xf32>
    %5 = arith.subf %3, %4 : vector<16x128xf32>
    %c0_4 = arith.constant 0 : index
    %c0_5 = arith.constant 0 : index
    %6 = vector.load %arg5[%c0_4, %c0_5] : memref<8x128xf32, #tpu.memory_space<vmem>>, vector<8x128xf32>
    %7 = arith.mulf %5, %5 : vector<16x128xf32>
    %8 = vector.shape_cast %7 : vector<16x128xf32> to vector<2x8x128xf32>
    %cst = arith.constant dense<0.000000e+00> : vector<8x128xf32>
    %9 = vector.multi_reduction <add>, %8, %cst [0] : vector<2x8x128xf32> to vector<8x128xf32>
    %10 = arith.addf %6, %9 : vector<8x128xf32>
    %c0_6 = arith.constant 0 : index
    %c0_7 = arith.constant 0 : index
    %11 = vector.load %arg5[%c0_6, %c0_7] : memref<8x128xf32, #tpu.memory_space<vmem>>, vector<8x128xf32>
    tpu.vector_store %arg5[%c0_6, %c0_7], %10 {strides = array<i32>} : memref<8x128xf32, #tpu.memory_space<vmem>>, vector<8x128xf32>,
    %c0_i32_8 = arith.constant 0 : i32
    %12 = arith.cmpi eq, %arg1, %c0_i32_8 : i32
    %13 = arith.extui %12 : i1 to i32
    %c0_i32_9 = arith.constant 0 : i32
    %14 = arith.cmpi ne, %13, %c0_i32_9 : i32
    scf.if %14 {
      %c0_10 = arith.constant 0 : index
      %c0_11 = arith.constant 0 : index
      %15 = vector.load %arg5[%c0_10, %c0_11] : memref<8x128xf32, #tpu.memory_space<vmem>>, vector<8x128xf32>
      %c0_12 = arith.constant 0 : index
      %c0_13 = arith.constant 0 : index
      %c0_14 = arith.constant 0 : index
      %16 = vector.load %arg4[%c0_12, %c0_13, %c0_14] : memref<1x8x128xf32, #tpu.memory_space<vmem>>, vector<1x8x128xf32>
      %17 = vector.shape_cast %16 : vector<1x8x128xf32> to vector<8x128xf32>
      %18 = vector.shape_cast %15 : vector<8x128xf32> to vector<1x8x128xf32>
      tpu.vector_store %arg4[%c0_12, %c0_13, %c0_14], %18 {strides = array<i32>} : memref<1x8x128xf32, #tpu.memory_space<vmem>>, vector<1x8x128xf32>,
    } else {
    }
    return
  }
  func.func @transform_0(%arg0: i32, %arg1: i32) -> (i32, i32) {
    %c1_i32 = arith.constant 1 : i32
    %0 = arith.muli %arg0, %c1_i32 : i32
    %1 = arith.addi %0, %arg1 : i32
    %c0_i32 = arith.constant 0 : i32
    %c0_i32_0 = arith.constant 0 : i32
    return %1, %c0_i32 : i32, i32
  }
  func.func @transform_1(%arg0: i32, %arg1: i32) -> (i32, i32) {
    %c1_i32 = arith.constant 1 : i32
    %0 = arith.muli %arg0, %c1_i32 : i32
    %1 = arith.addi %0, %arg1 : i32
    %c0_i32 = arith.constant 0 : i32
    %c0_i32_0 = arith.constant 0 : i32
    return %1, %c0_i32 : i32, i32
  }
  func.func @transform_2(%arg0: i32, %arg1: i32) -> (i32, i32, i32) {
    %c0_i32 = arith.constant 0 : i32
    %c0_i32_0 = arith.constant 0 : i32
    %c0_i32_1 = arith.constant 0 : i32
    return %arg0, %c0_i32, %c0_i32_0 : i32, i32, i32
  }
}

</mosaic_0001>

<bundles_post_ra>
// kernel: tpu_custom_call.1
= control target key start
LH: loop header
LB: loop body
LE: loop exit
PB: predicated region body
PF: predicated region fallthrough
CT: control target
= control target key end

     0   :  { %7 = vsyncpa [#allocation4], 0  ;;  %s855_s0 = inlined_call_operand.hbm [shape: f32[32,128], index: 0, kind: input, shape index: {}]   ;;  %s856_s1 = inlined_call_operand.hbm [shape: f32[32,128], index: 1, kind: input, shape index: {}]   ;;  %s857_s2 = inlined_call_operand.hbm [shape: f32[2,8,128], index: 2, kind: output, shape index: {}]  }
   0x1   :  { %9 = vsyncpa [#allocation4 + $0x1], 0 }
   0x2   :  { %10 = vsyncpa [#allocation7], 0 }
   0x3   :  { %12 = vsyncpa [#allocation7 + $0x1], 0 }
   0x4   :  { %13 = vsyncpa [#allocation5], 0 }
   0x5   :  { %15 = vsyncpa [#allocation5 + $0x1], 0  ;;  %s620_s9 = smov 0   ;;  %s622_s10 = smov 0  }
   0x6   :  { %s624_s11 = smov 0   ;;  %s626_s12 = smov 0  }
   0x7   :  { %s628_s13 = smov 0   ;;  %s630_s14 = smov 0  }
   0x8 LB: > { %s363_s15 = sadd.s32 4294967295, %s598_s14   ;;  %s364_s16 = sadd.s32 4294967294, %s598_s14   ;;  %s598_s14 = sphi %s630_s14, %s21_s14   ;;  %s594_s13 = sphi %s628_s13, %s875_s13   ;;  %s590_s12 = sphi %s626_s12, %s874_s12   ;;  %s586_s11 = sphi %s624_s11, %s873_s11   ;;  %s582_s10 = sphi %s622_s10, %s872_s10   ;;  %s578_s9 = sphi %s620_s9, %s871_s9  }
   0x9   : > { %s33_s17 = sadd.s32 1, %s594_s13  ;;  %s42_s18 = sadd.s32 1, %s586_s11 }
   0xa   : > { %p35_p0 = scmp.ge.s32.totalorder %s33_s17, 2  ;;  %p49_p1 = scmp.ne.s32.totalorder %s586_s11, %s582_s10 }
   0xb   : > { %p50_p2 = scmp.eq.s32.totalorder %s598_s14, 0  ;;  %p55_p3 = scmp.ne.s32.totalorder %s582_s10, %s578_s9 }
   0xc   : > { %s877_s17 = smov (%p35_p0, %s33_s17), 0  ;;  %p56_p5 = scmp.eq.s32.totalorder %s363_s15, 0 }
   0xd   : > { %p661_p4 = por %p50_p2, %p49_p1  ;;  %s39_s20 = ssub.s32 %s594_s13, %s877_s17 }
   0xe   : > { %p107_p6 = scmp.eq.s32.totalorder %s363_s15, 1  ;;  %p40_p7 = scmp.eq.s32.totalorder %s39_s20, 0 }
   0xf   : > { %p667_p8 = por %p56_p5, %p55_p3  ;;  %p113_p10 = scmp.eq.s32.totalorder %s364_s16, 1 }
  0x10   : > { %p671_p9 = por %p107_p6, %p49_p1  ;;  %p400_p13 = scmp.lt.s32.totalorder %s598_s14, 2 }
  0x11   : > { %s861_s21 = scalar_select %p667_p8, 1, 0 }
  0x12   : > { %s862_s22 = scalar_select %p671_p9, 1, 0 }
  0x13   : > { %s676_s23 = scalar_select %p40_p7, %s586_s11, %s42_s18  }
  0x14   : > { %p678_p11 = por %p113_p10, %p55_p3  ;;  %s685_s25 = sand.u32 1, %s586_s11  }
  0x15   : > { %s367_s26 = sshll.u32 %s685_s25, 4  ;;  %s381_s27 = sshll.u32 %s594_s13, 8 }
  0x16   : > { %s863_s24 = scalar_select %p678_p11, 1, 0 }
  0x17   : > { %s694_s30 = scalar_lea.hbm %s855_s0, %s381_s27  ;;  %s137_s3 = scalar_lea.vmem [#allocation3], %s367_s26 }
  0x18   : > { %s145_s4 = sshll.u32 %s137_s3, 4  ;;  %p702_p0 = pnand %p400_p13, %p661_p4  ;;  %s698_s4 = int_to_ptr.vmem [resolvable:$true] %s145_s4 }
  0x19   : > { %s134_s6 = scalar_lea.sflag [#allocation4], %s685_s25  ;;  %s452_s7 = scalar_lea.hbm %s694_s30, 256 }
  0x1a   : > { %p453_p2 = scmp.ne.s32.totalorder %s694_s30, %s452_s7  ;;  %p454_p3 = pneg %p702_p0 }
  0x1b   : > { %s457_s16 = scalar_lea.hbm %s855_s0, 512  ;;  %p458_p4 = scmp.lt.u32.totalorder %s694_s30, %s855_s0 }
  0x1c   : > { %p455_p5 = pnand %p454_p3, %p453_p2  ;;  %p459_p7 = scmp.lt.u32.totalorder %s457_s16, %s452_s7 }
  0x1d   : > { %p461_p13 = scmp.lt.u32.totalorder %s452_s7, %s694_s30 }
  0x1e   : > { %p456_p6 = pneg %p455_p5  ;;  %p460_p10 = por %p459_p7, %p458_p4 }
  0x20   : > { %p462_p12 = por %p461_p13, %p460_p10 }
  0x22   : > { %p463_p1 = pnand %p462_p12, %p456_p6 }
  0x24   : > { %466 = shalt.err (!%p463_p1)
}
  0x25   : > { %s467_s20 = scalar_lea.vmem %s698_s4, 256  ;;  %s600_s28 = smov [#allocation3]  }
  0x26   : > { %p468_p2 = scmp.ne.s32.totalorder %s698_s4, %s467_s20  ;;  %s472_s29 = sshll.u32 %s600_s28, 4  ;;  %s473_s29 = int_to_ptr.vmem [resolvable:$false] %s472_s29 }
  0x27   : > { %s474_s3 = scalar_lea.vmem %s473_s29, 512  ;;  %p475_p9 = scmp.lt.s32.totalorder %s698_s4, %s473_s29 }
  0x28   : > { %p470_p5 = pnand %p468_p2, %p454_p3  ;;  %p476_p4 = scmp.lt.s32.totalorder %s474_s3, %s467_s20 }
  0x2a   : > { %p471_p11 = pneg %p470_p5  ;;  %p477_p7 = por %p476_p4, %p475_p9 }
  0x2c   : > { %p478_p10 = pnand %p477_p7, %p471_p11 }
  0x2e   : > { %481 = shalt.err (!%p478_p10)
}
  0x2f   : > { %s601_s7 = smov 128   ;;  %s602_s8 = smov 8  }
  0x30   : > { %392 = dma.hbm_to_vmem [thread:$0]  (!%p702_p0), %s694_s30, 256, %s698_s4, %s134_s6, %s601_s7, %s601_s7, %s602_s8  }
  0x31   : > { %p175_p9 = scmp.lt.s32.totalorder %s598_s14, 3  ;;  %s744_s18 = scalar_lea.hbm %s856_s1, %s381_s27 }
  0x32   : > { %p865_p11 = scmp.ge.s32.totalorder %s598_s14, 1  ;;  %s159_s20 = scalar_lea.vmem [#allocation6], %s367_s26 }
  0x33   : > { %s167_s28 = sshll.u32 %s159_s20, 4  ;;  %s156_s30 = scalar_lea.sflag [#allocation7], %s685_s25  ;;  %s754_s28 = int_to_ptr.vmem [resolvable:$true] %s167_s28 }
  0x34   : > { %p748_p12 = pnand %p865_p11, %p175_p9  ;;  %s482_s4 = scalar_lea.hbm %s744_s18, 256 }
  0x35   : > { %p483_p1 = scmp.ne.s32.totalorder %s744_s18, %s482_s4  ;;  %s487_s29 = scalar_lea.hbm %s856_s1, 512 }
  0x36   : > { %p488_p2 = scmp.lt.u32.totalorder %s744_s18, %s856_s1  ;;  %p489_p5 = scmp.lt.u32.totalorder %s487_s29, %s482_s4 }
  0x37   : > { %p485_p6 = pnand %p483_p1, %p454_p3  ;;  %p491_p7 = scmp.lt.u32.totalorder %s482_s4, %s744_s18 }
  0x38   : > { %p490_p4 = por %p489_p5, %p488_p2 }
  0x39   : > { %p486_p13 = pneg %p485_p6 }
  0x3a   : > { %p492_p10 = por %p491_p7, %p490_p4 }
  0x3c   : > { %p493_p9 = pnand %p492_p10, %p486_p13 }
  0x3e   : > { %496 = shalt.err (!%p493_p9)
}
  0x3f   : > { %s497_s26 = scalar_lea.vmem %s754_s28, 256  ;;  %s603_s16 = smov [#allocation6]  }
  0x40   : > { %p498_p11 = scmp.ne.s32.totalorder %s754_s28, %s497_s26  ;;  %s502_s20 = sshll.u32 %s603_s16, 4  ;;  %s503_s20 = int_to_ptr.vmem [resolvable:$false] %s502_s20 }
  0x41   : > { %s504_s27 = scalar_lea.vmem %s503_s20, 512  ;;  %p505_p8 = scmp.lt.s32.totalorder %s754_s28, %s503_s20 }
  0x42   : > { %p500_p1 = pnand %p498_p11, %p454_p3  ;;  %p506_p2 = scmp.lt.s32.totalorder %s504_s27, %s497_s26 }
  0x44   : > { %p501_p6 = pneg %p500_p1  ;;  %p507_p5 = por %p506_p2, %p505_p8 }
  0x46   : > { %p508_p4 = pnand %p507_p5, %p501_p6 }
  0x48   : > { %511 = shalt.err (!%p508_p4)
}
  0x49   : > { %395 = dma.hbm_to_vmem [thread:$0]  (!%p702_p0), %s744_s18, 256, %s754_s28, %s156_s30, %s601_s7, %s601_s7, %s602_s8  }
  0x4a   : > { %179 = sbr.rel (%p748_p12) target bundleno = 110 (0x6e), region = 28  ;;  %s788_s4 = sand.u32 (!%p748_p12), 1, %s582_s10  }
  0x4b   : > { %s374_s6 = sshll.u32 (!%p748_p12), %s788_s4, 4  ;;  %s182_s29 = scalar_lea.sflag (!%p748_p12), [#allocation4], %s788_s4 }
  0x4c   : > { %s185_s5 = scalar_lea.vmem (!%p748_p12), [#allocation3], %s374_s6  ;;  %p867_p8 = scmp.ne.s32.totalorder (!%p748_p12), %s861_s21, 0 }
  0x51   : > { %565 = dma.done.wait (%p867_p8), %s182_s29, 256  }
  0x52   : > { %567 = vsyncadd (%p867_p8), %s182_s29, 4294967040  ;;  %s191_s25 = scalar_lea.sflag [#allocation7], %s788_s4  ;;  %s194_s7 = scalar_lea.vmem [#allocation6], %s374_s6 }
  0x53   : > { %569 = dma.done.wait (%p867_p8), %s191_s25, 256  }
  0x54   : > { %571 = vsyncadd (%p867_p8), %s191_s25, 4294967040  ;;  %s376_s8 = sshll.u32 %s788_s4, 3  ;;  %v229_v0 = vld [vmem:[%s185_s5] sm:$0xff]  ;;  %v230_v1 = vld [vmem:[%s185_s5 + $0x8] sm:$0xff]  ;;  %s378_s28 = sshll.u32 %s590_s12, 7 }
  0x55   : > { %v231_v2 = vld [vmem:[%s194_s7] sm:$0xff]  ;;  %v232_v3 = vld [vmem:[%s194_s7 + $0x8] sm:$0xff]  ;;  %s219_s18 = scalar_lea.vmem [#allocation8], %s376_s8  ;;  %s808_s3 = scalar_lea.hbm %s857_s2, %s378_s28 }
  0x56   : > { %v233_v4 = vsub.f32 %v229_v0, %v231_v2  ;;  %v234_v5 = vsub.f32 %v230_v1, %v232_v3  ;;  %s260_s19 = sshll.u32 %s219_s18, 4  ;;  %s247_s15 = scalar_lea.sflag [#allocation5], %s788_s4  ;;  %s803_s19 = int_to_ptr.vmem [resolvable:$true] %s260_s19 }
  0x57   : > { %s512_s26 = scalar_lea.vmem %s803_s19, 128  ;;  %p868_p3 = scmp.ne.s32.totalorder %s862_s22, 0 }
  0x58   : > { %v236_v6 = vmul.f32 %v233_v4, %v233_v4  ;;  %v237_v7 = vmul.f32 %v234_v5, %v234_v5  ;;  %p513_p0 = scmp.ne.s32.totalorder %s803_s19, %s512_s26  ;;  %s604_s12 = smov [#allocation8]  }
  0x59   : > { %s516_s16 = sshll.u32 %s604_s12, 4  ;;  %s517_s16 = int_to_ptr.vmem [resolvable:$false] %s516_s16 }
  0x5a   : > { %v238_v8 = vadd.f32 %v237_v7, %v236_v6  ;;  %p514_p12 = pnand %p513_p0, %p868_p3  ;;  %s518_s20 = scalar_lea.vmem %s517_s16, 256 }
  0x5b   : > { %p519_p7 = scmp.lt.s32.totalorder %s803_s19, %s517_s16  ;;  %p520_p10 = scmp.lt.s32.totalorder %s518_s20, %s512_s26 }
  0x5c   : > { %245 = vst [vmem:[%s219_s18] sm:$0xff] %v238_v8  ;;  %p515_p13 = pneg %p514_p12 }
  0x5d   : > { %p521_p9 = por %p520_p10, %p519_p7 }
  0x5f   : > { %p522_p11 = pnand %p521_p9, %p515_p13 }
  0x61   : > { %525 = shalt.err (!%p522_p11)
}
  0x62   : > { %s526_s27 = scalar_lea.hbm %s808_s3, 128  ;;  %s530_s29 = scalar_lea.hbm %s857_s2, 256 }
  0x63   : > { %p527_p1 = scmp.ne.s32.totalorder %s808_s3, %s526_s27  ;;  %p531_p5 = scmp.lt.u32.totalorder %s808_s3, %s857_s2 }
  0x64   : > { %p532_p4 = scmp.lt.u32.totalorder %s530_s29, %s526_s27  ;;  %p534_p0 = scmp.lt.u32.totalorder %s526_s27, %s808_s3 }
  0x65   : > { %p528_p6 = pnand %p527_p1, %p868_p3 }
  0x66   : > { %p533_p8 = por %p532_p4, %p531_p5 }
  0x67   : > { %p529_p2 = pneg %p528_p6 }
  0x68   : > { %p535_p12 = por %p534_p0, %p533_p8 }
  0x6a   : > { %p536_p13 = pnand %p535_p12, %p529_p2 }
  0x6c   : > { %539 = shalt.err (!%p536_p13)
}
  0x6d   : > { %387 = dma.vmem_to_hbm [thread:$0]  (%p868_p3), %s803_s19, 128, %s808_s3, %s247_s15  }
  0x6e PF: > { %s272_s7 = sand.u32 1, %s578_s9   ;;  %p869_p7 = scmp.ne.s32.totalorder %s863_s24, 0 }
  0x6f   : > { %p870_p10 = scmp.ge.s32.totalorder %s598_s14, 2  ;;  %s273_s8 = scalar_lea.sflag [#allocation5], %s272_s7 }
  0x71   : > { %p397_p9 = pnand %p870_p10, %p869_p7 }
  0x73   : > { %573 = dma.done.wait (!%p397_p9), %s273_s8, 128  }
  0x74   : > { %575 = vsyncadd (!%p397_p9), %s273_s8, 4294967168  ;;  %s21_s14 = sadd.s32 1, %s598_s14   ;;  %s871_s9 = smov %s582_s10 }
  0x75   : > { %p18_p11 = scmp.ge.s32.totalorder %s21_s14, 4   ;;  %s872_s10 = smov %s586_s11 }
  0x76   : > { %s873_s11 = smov %s676_s23  ;;  %s874_s12 = smov %s594_s13 }
  0x77   : > { %s875_s13 = smov %s877_s17  ;;  %20 = sbr.rel (!%p18_p11) target bundleno = 8 (0x8), region = 94 }
  0x7e   :  { %278 = vsyncpa [#allocation4], 1 }
  0x7f   :  { %280 = vsyncpa [#allocation4 + $0x1], 1 }
  0x80   :  { %281 = vsyncpa [#allocation7], 1 }
  0x81   :  { %283 = vsyncpa [#allocation7 + $0x1], 1 }
  0x82   :  { %284 = vsyncpa [#allocation5], 1 }
  0x83   :  { %286 = vsyncpa [#allocation5 + $0x1], 1 }

</bundles_post_ra>
